<compile_context>
chip_gen: v7x
topology: tpu7x:2x2x1
jax: 0.10.0
libtpu: 0.0.40
codegen_flags: <defaults>
</compile_context>

<pallas_src>
import functools

import jax
import jax.numpy as jnp
from jax.experimental import pallas as pl
from jax.experimental.pallas import tpu as pltpu

EPS = 1e-5


def _pick_row_tile(total, cap):
    """Largest row tile <= cap that evenly divides `total`.

    Prefers sublane-aligned multiples of 8; falls back to `total` (a full-dim block
    is always a legal BlockSpec) if no suitable divisor exists.
    """
    if total <= cap:
        return total
    start = cap - (cap % 8)
    for d in range(start, 0, -8):
        if total % d == 0:
            return d
    return total


def _conv_stats_kernel(xt_ref, wb_ref, gt_ref, y_ref, stats_ref):
    # xt_ref   : (TH+2, PWC)     bf16  packed, zero-padded input rows (1-row halo)
    # wb_ref   : (3, PWC, WCO)   bf16  block-banded conv weights (one slab per kh)
    # gt_ref   : (Cout, WCO)     f32   0/1 pooling matrix: channel c -> lanes w*Cout+c
    # y_ref    : (TH, WCO)       bf16  lane-dense conv output (pre-BN)
    # stats_ref: (2, Cout)       f32   per-image [sum, sum_sq], accumulated over T
    TH = y_ref.shape[0]
    t = pl.program_id(1)

    xfull = xt_ref[...]                                            # one full-tile load
    # 3 MXU matmuls (one per kernel row, K = (W+2)*Cin, N = W*Cout); the kh row offset
    # is applied on the f32 results, so no unaligned slicing of packed bf16 is needed.
    z0 = jnp.dot(xfull, wb_ref[0], preferred_element_type=jnp.float32)
    z1 = jnp.dot(xfull, wb_ref[1], preferred_element_type=jnp.float32)
    z2 = jnp.dot(xfull, wb_ref[2], preferred_element_type=jnp.float32)
    acc = z0[0:TH] + z1[1:TH + 1] + z2[2:TH + 2]                   # (TH, WCO) f32
    y_ref[...] = acc.astype(y_ref.dtype)

    # one-pass per-channel partial stats from the f32 accumulator, fused with the conv
    colsum = jnp.sum(acc, axis=0, keepdims=True)                   # (1, WCO)
    colsq = jnp.sum(acc * acc, axis=0, keepdims=True)              # (1, WCO)
    part = jnp.concatenate([colsum, colsq], axis=0)                # (2, WCO)
    pooled = jnp.einsum('sk,ck->sc', part, gt_ref[...],
                        preferred_element_type=jnp.float32)        # (2, Cout)

    # stats block is resident across the 'arbitrary' T axis -> accumulate in place
    @pl.when(t == 0)
    def _():
        stats_ref[...] = jnp.zeros_like(stats_ref)

    stats_ref[...] += pooled


def _bn_relu_kernel(y_ref, scale_ref, shift_ref, o_ref):
    # y_ref: (TR, WCO) bf16; scale_ref/shift_ref: (1, WCO) f32 (pre-fused BN affine)
    y = y_ref[...].astype(jnp.float32)
    o_ref[...] = jnp.maximum(y * scale_ref[...] + shift_ref[...], 0.0)


@jax.jit
def branch_conv_block_up(x_nchw, w_oihw, bias, gamma, beta):
    """Conv2d(3x3,s1,p1) -> BatchNorm2d (batch stats) -> ReLU. (N,Cin,H,W) -> (N,Cout,H,W)."""
    del bias  # conv bias cancels exactly under training-mode BatchNorm
    N, Cin, H, W = x_nchw.shape
    Cout = w_oihw.shape[0]
    f32, bf16 = jnp.float32, jnp.bfloat16

    TH = _pick_row_tile(H, 128)            # 128 is safe on v5e; v6e/v7x could use 256
    T = H // TH
    PWC = (W + 2) * Cin                    # packed, padded input lane width
    WCO = W * Cout                         # lane-dense output width (128 at test shape)

    # ---- glue: layout only (pack W*C into lanes, pad, build halo row tiles) ----
    x_pack = jnp.transpose(x_nchw, (0, 2, 3, 1)).astype(bf16).reshape(N, H, W * Cin)
    xpad = jnp.pad(x_pack, ((0, 0), (1, 1), (Cin, Cin)))           # (N, H+2, PWC)
    if T == 1:
        xt = xpad[:, None]                                         # no halo duplication
    else:
        xt = jnp.stack([xpad[:, t * TH:t * TH + TH + 2, :] for t in range(T)], axis=1)
    # xt: (N, T, TH+2, PWC) bf16

    # ---- glue: constant weight / helper matrices ----
    w_hwio = jnp.transpose(w_oihw, (2, 3, 1, 0)).astype(f32)       # (3,3,Cin,Cout)
    band = jnp.zeros((3, W + 2, W), f32)
    eye_w = jnp.eye(W, dtype=f32)
    for kw in range(3):
        band = band.at[kw, kw:kw + W, :].set(eye_w)                # band[kw, w+kw, w] = 1
    # wb[kh, (w+kw)*Cin + ci, w*Cout + co] = w_hwio[kh, kw, ci, co]
    wb = jnp.einsum('krw,hkio->hriwo', band, w_hwio).reshape(3, PWC, WCO).astype(bf16)
    gt = jnp.tile(jnp.eye(Cout, dtype=f32), (1, W))                # (Cout, WCO)

    # ---- phase 1: conv (3 banded MXU matmuls) + per-image BN partial stats ----
    flops = 2 * 3 * N * T * (TH + 2) * PWC * WCO
    bytes_accessed = (xt.size * 2 + wb.size * 2 + gt.size * 4
                      + N * H * WCO * 2 + N * 2 * Cout * 4)
    y, stats = pl.pallas_call(
        _conv_stats_kernel,
        grid=(N, T),
        in_specs=[
            pl.BlockSpec((None, None, TH + 2, PWC), lambda n, t: (n, t, 0, 0)),
            pl.BlockSpec((3, PWC, WCO), lambda n, t: (0, 0, 0)),
            pl.BlockSpec((Cout, WCO), lambda n, t: (0, 0)),
        ],
        out_specs=[
            pl.BlockSpec((None, None, TH, WCO), lambda n, t: (n, t, 0, 0)),
            pl.BlockSpec((None, 2, Cout), lambda n, t: (n, 0, 0)),
        ],
        out_shape=[
            jax.ShapeDtypeStruct((N, T, TH, WCO), bf16),
            jax.ShapeDtypeStruct((N, 2, Cout), f32),
        ],
        compiler_params=pltpu.CompilerParams(
            dimension_semantics=("parallel", "arbitrary")),
        cost_estimate=pl.CostEstimate(flops=flops, transcendentals=0,
                                      bytes_accessed=bytes_accessed),
    )(xt, wb, gt)

    # ---- glue: global BN stats -> fused lane-dense scale/shift (tiny, done once) ----
    # TODO(synk): E[x^2]-mean^2 in f32 can cancel for inputs with a very large DC offset.
    inv_count = 1.0 / float(N * H * W)
    totals = jnp.sum(stats, axis=0)                                # (2, Cout)
    mean = totals[0] * inv_count
    var = totals[1] * inv_count - mean * mean                      # biased variance
    scale = gamma.astype(f32) * jax.lax.rsqrt(var + EPS)           # (Cout,)
    shift = beta.astype(f32) - mean * scale
    scale_l = jnp.tile(scale, W).reshape(1, WCO)                   # lane (w*Cout+c) -> c
    shift_l = jnp.tile(shift, W).reshape(1, WCO)

    # ---- phase 2: flat elementwise y*scale+shift -> ReLU over (N*H, WCO) ----
    R = N * H
    y_flat = y.reshape(R, WCO)
    TR = _pick_row_tile(R, 1024)
    out_flat = pl.pallas_call(
        _bn_relu_kernel,
        grid=(R // TR,),
        in_specs=[
            pl.BlockSpec((TR, WCO), lambda r: (r, 0)),
            pl.BlockSpec((1, WCO), lambda r: (0, 0)),
            pl.BlockSpec((1, WCO), lambda r: (0, 0)),
        ],
        out_specs=pl.BlockSpec((TR, WCO), lambda r: (r, 0)),
        out_shape=jax.ShapeDtypeStruct((R, WCO), f32),
        compiler_params=pltpu.CompilerParams(dimension_semantics=("parallel",)),
    )(y_flat, scale_l, shift_l)

    # glue: back to NCHW
    out_nhwc = out_flat.reshape(N, H, W, Cout)
    return jnp.transpose(out_nhwc, (0, 3, 1, 2))


def reference(x_nchw, w_oihw, bias, gamma, beta):
    y = jax.lax.conv_general_dilated(
        x_nchw.astype(jnp.float32), w_oihw.astype(jnp.float32),
        window_strides=(1, 1), padding="SAME",
        dimension_numbers=("NCHW", "OIHW", "NCHW"))
    y = y + bias[None, :, None, None]
    mean = jnp.mean(y, axis=(0, 2, 3), keepdims=True)
    var = jnp.mean((y - mean) ** 2, axis=(0, 2, 3), keepdims=True)
    z = (y - mean) * jax.lax.rsqrt(var + EPS)
    z = z * gamma[None, :, None, None] + beta[None, :, None, None]
    return jnp.maximum(z, 0.0)


if __name__ == "__main__":
    key = jax.random.PRNGKey(0)
    k_x, k_w, k_b, k_g, k_be = jax.random.split(key, 5)

    N, Cin, H, W = 2, 4, 16, 16
    Cout = 8

    x = jax.random.normal(k_x, (N, Cin, H, W), dtype=jnp.float32)
    # Conv2d params (PyTorch shapes: (Cout, Cin, 3, 3)); BatchNorm2d affine params.
    w = jax.random.normal(k_w, (Cout, Cin, 3, 3), dtype=jnp.float32) * 0.1
    b = jax.random.normal(k_b, (Cout,), dtype=jnp.float32) * 0.1
    gamma = 1.0 + 0.1 * jax.random.normal(k_g, (Cout,), dtype=jnp.float32)
    beta = 0.1 * jax.random.normal(k_be, (Cout,), dtype=jnp.float32)

    out = branch_conv_block_up(x, w, b, gamma, beta)
    jax.block_until_ready(out)

    ref = reference(x, w, b, gamma, beta)
    assert out.shape == (N, Cout, H, W)
    # bf16 MXU operands + bf16 intermediate y -> compare at bf16-level tolerance
    assert jnp.allclose(out, ref, rtol=3e-2, atol=3e-2), "mismatch vs reference"

    print("KERNEL_OK")
</pallas_src>

<mosaic_0001>
module attributes {stable_mosaic.version = 11 : i64} {
  func.func @_conv_stats_kernel(%arg0: i32, %arg1: i32, %arg2: memref<1x1x18x72xbf16, #tpu.memory_space<vmem>>, %arg3: memref<3x72x128xbf16, #tpu.memory_space<vmem>>, %arg4: memref<8x128xf32, #tpu.memory_space<vmem>>, %arg5: memref<1x1x16x128xbf16, #tpu.memory_space<vmem>>, %arg6: memref<1x2x8xf32, #tpu.memory_space<vmem>>) attributes {dimension_semantics = [#tpu.dimension_semantics<parallel>, #tpu.dimension_semantics<arbitrary>], iteration_bounds = array<i64: 2, 1>, scalar_prefetch = 0 : i64, scratch_operands = 0 : i64, tpu.core_type = #tpu.core_type<tc>, window_params = [{transform_indices = @transform_0, window_bounds = array<i64: 1, 1, 18, 72>}, {pipeline_mode = #tpu.pipeline_mode<synchronous>, transform_indices = @transform_1, window_bounds = array<i64: 3, 72, 128>}, {pipeline_mode = #tpu.pipeline_mode<synchronous>, transform_indices = @transform_2, window_bounds = array<i64: 8, 128>}, {transform_indices = @transform_3, window_bounds = array<i64: 1, 1, 16, 128>}, {transform_indices = @transform_4, window_bounds = array<i64: 1, 2, 8>}]} {
    %c0 = arith.constant 0 : index
    %c0_0 = arith.constant 0 : index
    %c0_1 = arith.constant 0 : index
    %c0_2 = arith.constant 0 : index
    %0 = vector.load %arg2[%c0, %c0_0, %c0_1, %c0_2] : memref<1x1x18x72xbf16, #tpu.memory_space<vmem>>, vector<1x1x18x72xbf16>
    %1 = vector.shape_cast %0 : vector<1x1x18x72xbf16> to vector<18x72xbf16>
    %c0_3 = arith.constant 0 : index
    %c0_4 = arith.constant 0 : index
    %c0_5 = arith.constant 0 : index
    %2 = vector.load %arg3[%c0_3, %c0_4, %c0_5] : memref<3x72x128xbf16, #tpu.memory_space<vmem>>, vector<1x72x128xbf16>
    %3 = vector.shape_cast %2 : vector<1x72x128xbf16> to vector<72x128xbf16>
    %cst = arith.constant dense<0.000000e+00> : vector<18x128xf32>
    %4 = tpu.matmul %1, %3, %cst {dimension_numbers = #tpu.dot_dimension_numbers<[1], [0], [0], [1], [0, 0, 1, 1], [], []>} : vector<18x72xbf16>, vector<72x128xbf16>, vector<18x128xf32> -> vector<18x128xf32>
    %c1 = arith.constant 1 : index
    %c0_6 = arith.constant 0 : index
    %c0_7 = arith.constant 0 : index
    %5 = vector.load %arg3[%c1, %c0_6, %c0_7] : memref<3x72x128xbf16, #tpu.memory_space<vmem>>, vector<1x72x128xbf16>
    %6 = vector.shape_cast %5 : vector<1x72x128xbf16> to vector<72x128xbf16>
    %cst_8 = arith.constant dense<0.000000e+00> : vector<18x128xf32>
    %7 = tpu.matmul %1, %6, %cst_8 {dimension_numbers = #tpu.dot_dimension_numbers<[1], [0], [0], [1], [0, 0, 1, 1], [], []>} : vector<18x72xbf16>, vector<72x128xbf16>, vector<18x128xf32> -> vector<18x128xf32>
    %c2 = arith.constant 2 : index
    %c0_9 = arith.constant 0 : index
    %c0_10 = arith.constant 0 : index
    %8 = vector.load %arg3[%c2, %c0_9, %c0_10] : memref<3x72x128xbf16, #tpu.memory_space<vmem>>, vector<1x72x128xbf16>
    %9 = vector.shape_cast %8 : vector<1x72x128xbf16> to vector<72x128xbf16>
    %cst_11 = arith.constant dense<0.000000e+00> : vector<18x128xf32>
    %10 = tpu.matmul %1, %9, %cst_11 {dimension_numbers = #tpu.dot_dimension_numbers<[1], [0], [0], [1], [0, 0, 1, 1], [], []>} : vector<18x72xbf16>, vector<72x128xbf16>, vector<18x128xf32> -> vector<18x128xf32>
    %11 = vector.extract_strided_slice %4 {offsets = [0, 0], sizes = [16, 128], strides = [1, 1]} : vector<18x128xf32> to vector<16x128xf32>
    %12 = vector.extract_strided_slice %7 {offsets = [1, 0], sizes = [16, 128], strides = [1, 1]} : vector<18x128xf32> to vector<16x128xf32>
    %13 = arith.addf %11, %12 : vector<16x128xf32>
    %14 = vector.extract_strided_slice %10 {offsets = [2, 0], sizes = [16, 128], strides = [1, 1]} : vector<18x128xf32> to vector<16x128xf32>
    %15 = arith.addf %13, %14 : vector<16x128xf32>
    %16 = arith.truncf %15 : vector<16x128xf32> to vector<16x128xbf16>
    %c0_12 = arith.constant 0 : index
    %c0_13 = arith.constant 0 : index
    %c0_14 = arith.constant 0 : index
    %c0_15 = arith.constant 0 : index
    %17 = vector.load %arg5[%c0_12, %c0_13, %c0_14, %c0_15] : memref<1x1x16x128xbf16, #tpu.memory_space<vmem>>, vector<1x1x16x128xbf16>
    %18 = vector.shape_cast %17 : vector<1x1x16x128xbf16> to vector<16x128xbf16>
    %19 = vector.shape_cast %16 : vector<16x128xbf16> to vector<1x1x16x128xbf16>
    tpu.vector_store %arg5[%c0_12, %c0_13, %c0_14, %c0_15], %19 {strides = array<i32>} : memref<1x1x16x128xbf16, #tpu.memory_space<vmem>>, vector<1x1x16x128xbf16>,
    %cst_16 = arith.constant dense<0.000000e+00> : vector<128xf32>
    %20 = vector.multi_reduction <add>, %15, %cst_16 [0] : vector<16x128xf32> to vector<128xf32>
    %21 = vector.shape_cast %20 : vector<128xf32> to vector<1x128xf32>
    %22 = arith.mulf %15, %15 : vector<16x128xf32>
    %cst_17 = arith.constant dense<0.000000e+00> : vector<128xf32>
    %23 = vector.multi_reduction <add>, %22, %cst_17 [0] : vector<16x128xf32> to vector<128xf32>
    %24 = vector.shape_cast %23 : vector<128xf32> to vector<1x128xf32>
    %25 = tpu.concatenate %21, %24 in 0 : vector<1x128xf32>, vector<1x128xf32> -> vector<2x128xf32>
    %c0_18 = arith.constant 0 : index
    %c0_19 = arith.constant 0 : index
    %26 = vector.load %arg4[%c0_18, %c0_19] : memref<8x128xf32, #tpu.memory_space<vmem>>, vector<8x128xf32>
    "tpu.trace_start"() <{level = 10 : i32, message = "sk,ck->sc"}> : () -> ()
    %cst_20 = arith.constant dense<0.000000e+00> : vector<2x8xf32>
    %27 = tpu.matmul %25, %26, %cst_20 {dimension_numbers = #tpu.dot_dimension_numbers<[1], [1], [0], [0], [0, 0, 1, 0], [], []>} : vector<2x128xf32>, vector<8x128xf32>, vector<2x8xf32> -> vector<2x8xf32>
    %c0_i32 = arith.constant 0 : i32
    "tpu.trace_stop"() : () -> ()
    %28 = arith.cmpi eq, %arg1, %c0_i32 : i32
    %29 = arith.extui %28 : i1 to i32
    %c0_i32_21 = arith.constant 0 : i32
    %30 = arith.cmpi ne, %29, %c0_i32_21 : i32
    scf.if %30 {
      %cst_28 = arith.constant 0.000000e+00 : f32
      %37 = vector.broadcast %cst_28 : f32 to vector<2x8xf32>
      %c0_29 = arith.constant 0 : index
      %c0_30 = arith.constant 0 : index
      %c0_31 = arith.constant 0 : index
      %38 = vector.load %arg6[%c0_29, %c0_30, %c0_31] : memref<1x2x8xf32, #tpu.memory_space<vmem>>, vector<1x2x8xf32>
      %39 = vector.shape_cast %38 : vector<1x2x8xf32> to vector<2x8xf32>
      %40 = vector.shape_cast %37 : vector<2x8xf32> to vector<1x2x8xf32>
      tpu.vector_store %arg6[%c0_29, %c0_30, %c0_31], %40 {strides = array<i32>} : memref<1x2x8xf32, #tpu.memory_space<vmem>>, vector<1x2x8xf32>,
    } else {
    }
    %c0_22 = arith.constant 0 : index
    %c0_23 = arith.constant 0 : index
    %c0_24 = arith.constant 0 : index
    %31 = vector.load %arg6[%c0_22, %c0_23, %c0_24] : memref<1x2x8xf32, #tpu.memory_space<vmem>>, vector<1x2x8xf32>
    %32 = vector.shape_cast %31 : vector<1x2x8xf32> to vector<2x8xf32>
    %33 = arith.addf %32, %27 : vector<2x8xf32>
    %c0_25 = arith.constant 0 : index
    %c0_26 = arith.constant 0 : index
    %c0_27 = arith.constant 0 : index
    %34 = vector.load %arg6[%c0_25, %c0_26, %c0_27] : memref<1x2x8xf32, #tpu.memory_space<vmem>>, vector<1x2x8xf32>
    %35 = vector.shape_cast %34 : vector<1x2x8xf32> to vector<2x8xf32>
    %36 = vector.shape_cast %33 : vector<2x8xf32> to vector<1x2x8xf32>
    tpu.vector_store %arg6[%c0_25, %c0_26, %c0_27], %36 {strides = array<i32>} : memref<1x2x8xf32, #tpu.memory_space<vmem>>, vector<1x2x8xf32>,
    return
  }
  func.func @transform_0(%arg0: i32, %arg1: i32) -> (i32, i32, i32, i32) {
    %c0_i32 = arith.constant 0 : i32
    %c0_i32_0 = arith.constant 0 : i32
    %c0_i32_1 = arith.constant 0 : i32
    return %arg0, %arg1, %c0_i32, %c0_i32_0 : i32, i32, i32, i32
  }
  func.func @transform_1(%arg0: i32, %arg1: i32) -> (i32, i32, i32) {
    %c0_i32 = arith.constant 0 : i32
    %c0_i32_0 = arith.constant 0 : i32
    %c0_i32_1 = arith.constant 0 : i32
    %c0_i32_2 = arith.constant 0 : i32
    return %c0_i32, %c0_i32_0, %c0_i32_1 : i32, i32, i32
  }
  func.func @transform_2(%arg0: i32, %arg1: i32) -> (i32, i32) {
    %c0_i32 = arith.constant 0 : i32
    %c0_i32_0 = arith.constant 0 : i32
    %c0_i32_1 = arith.constant 0 : i32
    return %c0_i32, %c0_i32_0 : i32, i32
  }
  func.func @transform_3(%arg0: i32, %arg1: i32) -> (i32, i32, i32, i32) {
    %c0_i32 = arith.constant 0 : i32
    %c0_i32_0 = arith.constant 0 : i32
    %c0_i32_1 = arith.constant 0 : i32
    return %arg0, %arg1, %c0_i32, %c0_i32_0 : i32, i32, i32, i32
  }
  func.func @transform_4(%arg0: i32, %arg1: i32) -> (i32, i32, i32) {
    %c0_i32 = arith.constant 0 : i32
    %c0_i32_0 = arith.constant 0 : i32
    %c0_i32_1 = arith.constant 0 : i32
    return %arg0, %c0_i32, %c0_i32_0 : i32, i32, i32
  }
}

module attributes {stable_mosaic.version = 11 : i64} {
  func.func @_bn_relu_kernel(%arg0: i32, %arg1: memref<32x128xbf16, #tpu.memory_space<vmem>>, %arg2: memref<1x128xf32, #tpu.memory_space<vmem>>, %arg3: memref<1x128xf32, #tpu.memory_space<vmem>>, %arg4: memref<32x128xf32, #tpu.memory_space<vmem>>) attributes {dimension_semantics = [#tpu.dimension_semantics<parallel>], iteration_bounds = array<i64: 1>, scalar_prefetch = 0 : i64, scratch_operands = 0 : i64, tpu.core_type = #tpu.core_type<tc>, window_params = [{transform_indices = @transform_0, window_bounds = array<i64: 32, 128>}, {pipeline_mode = #tpu.pipeline_mode<synchronous>, transform_indices = @transform_1, window_bounds = array<i64: 1, 128>}, {pipeline_mode = #tpu.pipeline_mode<synchronous>, transform_indices = @transform_2, window_bounds = array<i64: 1, 128>}, {transform_indices = @transform_3, window_bounds = array<i64: 32, 128>}]} {
    %c0 = arith.constant 0 : index
    %c0_0 = arith.constant 0 : index
    %0 = vector.load %arg1[%c0, %c0_0] : memref<32x128xbf16, #tpu.memory_space<vmem>>, vector<32x128xbf16>
    %1 = arith.extf %0 : vector<32x128xbf16> to vector<32x128xf32>
    %c0_1 = arith.constant 0 : index
    %c0_2 = arith.constant 0 : index
    %2 = vector.load %arg2[%c0_1, %c0_2] : memref<1x128xf32, #tpu.memory_space<vmem>>, vector<1x128xf32>
    %3 = vector.broadcast %2 : vector<1x128xf32> to vector<32x128xf32>
    %4 = arith.mulf %1, %3 : vector<32x128xf32>
    %c0_3 = arith.constant 0 : index
    %c0_4 = arith.constant 0 : index
    %5 = vector.load %arg3[%c0_3, %c0_4] : memref<1x128xf32, #tpu.memory_space<vmem>>, vector<1x128xf32>
    %6 = vector.broadcast %5 : vector<1x128xf32> to vector<32x128xf32>
    %7 = arith.addf %4, %6 : vector<32x128xf32>
    %cst = arith.constant 0.000000e+00 : f32
    %8 = vector.broadcast %cst : f32 to vector<32x128xf32>
    %9 = arith.maximumf %7, %8 : vector<32x128xf32>
    %c0_5 = arith.constant 0 : index
    %c0_6 = arith.constant 0 : index
    %10 = vector.load %arg4[%c0_5, %c0_6] : memref<32x128xf32, #tpu.memory_space<vmem>>, vector<32x128xf32>
    tpu.vector_store %arg4[%c0_5, %c0_6], %9 {strides = array<i32>} : memref<32x128xf32, #tpu.memory_space<vmem>>, vector<32x128xf32>,
    return
  }
  func.func @transform_0(%arg0: i32) -> (i32, i32) {
    %c0_i32 = arith.constant 0 : i32
    %c0_i32_0 = arith.constant 0 : i32
    return %arg0, %c0_i32 : i32, i32
  }
  func.func @transform_1(%arg0: i32) -> (i32, i32) {
    %c0_i32 = arith.constant 0 : i32
    %c0_i32_0 = arith.constant 0 : i32
    %c0_i32_1 = arith.constant 0 : i32
    return %c0_i32, %c0_i32_0 : i32, i32
  }
  func.func @transform_2(%arg0: i32) -> (i32, i32) {
    %c0_i32 = arith.constant 0 : i32
    %c0_i32_0 = arith.constant 0 : i32
    %c0_i32_1 = arith.constant 0 : i32
    return %c0_i32, %c0_i32_0 : i32, i32
  }
  func.func @transform_3(%arg0: i32) -> (i32, i32) {
    %c0_i32 = arith.constant 0 : i32
    %c0_i32_0 = arith.constant 0 : i32
    return %arg0, %c0_i32 : i32, i32
  }
}

</mosaic_0001>

<bundles_post_ra>
// kernel: tile.19
= control target key start
LH: loop header
LB: loop body
LE: loop exit
PB: predicated region body
PF: predicated region fallthrough
CT: control target
= control target key end

     0   :  { %vm6_vm0 = vcmask 1043458   ;;  %vm10_vm1 = vcmask 1045508   ;;  %vm14_vm2 = vcmask 1047558   ;;  %s19_s6 = smov 3  ;;  %s22_s7 = smov 12  ;;  %vm16_vm3 = vcmask 64512   ;;  %s736_s0 = inlined_call_operand.vmem [shape: f32[8,16,8], index: 0, kind: input, shape index: {}]   ;;  %s737_s1 = inlined_call_operand.vmem [shape: f32[8,128], index: 1, kind: output, shape index: {}]  }
   0x1   :  { %v348_v0 = vld [vmem:[%s736_s0 + $0xf] ss:$16 sm:%s19_s6]   ;;  %s27_s12 = smov 48  ;;  %s32_s13 = smov 192  ;;  %vm38_vm4 = vcmask 1048512   ;;  %vm60_vm5 = vcmask 982912  }
   0x2   :  { %v349_v1 = vld [vmem:[%s736_s0 + $0xf] ss:$16 sm:%s22_s7]   ;;  %s63_s18 = smov 3  ;;  %s66_s21 = smov 12  ;;  %vm82_vm6 = vcmask 917312   ;;  %vm104_vm7 = vcmask 851712  }
   0x3   :  { %v25_v2 = vsel %vm6_vm0, %v349_v1, %v348_v0  ;;  %v350_v3 = vld [vmem:[%s736_s0 + $0xf] ss:$16 sm:%s27_s12]   ;;  %v356_v6 = vld [vmem:[%s736_s0 + $0xd] ss:$16 sm:%s63_s18]   ;;  %s71_s22 = smov 48  ;;  %s76_s27 = smov 192 }
   0x4   :  { %v351_v4 = vld [vmem:[%s736_s0 + $0xf] ss:$16 sm:%s32_s13]   ;;  %v30_v5 = vsel %vm10_vm1, %v350_v3, %v25_v2  ;;  %v357_v8 = vld [vmem:[%s736_s0 + $0xd] ss:$16 sm:%s66_s21]   ;;  %s423_s28 = smov 120   ;;  %s41_s2 = smov 3 }
   0x5   :  { %v35_v7 = vsel %vm14_vm2, %v351_v4, %v30_v5  ;;  %v358_v9 = vld [vmem:[%s736_s0 + $0xd] ss:$16 sm:%s71_s22]   ;;  %v69_v10 = vsel %vm6_vm0, %v357_v8, %v356_v6  ;;  %s44_s3 = smov 12  ;;  %v352_v13 = vld [vmem:[%s736_s0 + $0xe] ss:$16 sm:%s41_s2]   ;;  %s49_s8 = smov 48 }
   0x6   :  { %36 = vrot.lane.b32.xlu0 %v35_v7, %s423_s28  ;;  %v359_v11 = vld [vmem:[%s736_s0 + $0xd] ss:$16 sm:%s76_s27]   ;;  %v74_v12 = vsel %vm10_vm1, %v358_v9, %v69_v10  ;;  %s54_s9 = smov 192  ;;  %s85_s14 = smov 3  ;;  %vm126_vm8 = vcmask 786112   ;;  %vm148_vm9 = vcmask 720512  }
   0x7   :  { %v353_v14 = vld [vmem:[%s736_s0 + $0xe] ss:$16 sm:%s44_s3]   ;;  %v79_v15 = vsel %vm14_vm2, %v359_v11, %v74_v12  ;;  %s424_s15 = smov 104   ;;  %v360_v20 = vld [vmem:[%s736_s0 + $0xc] ss:$16 sm:%s85_s14]   ;;  %s88_s18 = smov 12 }
   0x8   :  { %v47_v16 = vsel %vm6_vm0, %v353_v14, %v352_v13  ;;  %v354_v17 = vld [vmem:[%s736_s0 + $0xe] ss:$16 sm:%s49_s8]   ;;  %80 = vrot.lane.b32.xlu1 %v79_v15, %s424_s15  ;;  %s93_s19 = smov 48  ;;  %s98_s24 = smov 192  ;;  %vm170_vm10 = vcmask 654912   ;;  %vm192_vm11 = vcmask 589312  }
   0x9   :  { %v355_v18 = vld [vmem:[%s736_s0 + $0xe] ss:$16 sm:%s54_s9]   ;;  %v52_v19 = vsel %vm10_vm1, %v354_v17, %v47_v16  ;;  %v361_v22 = vld [vmem:[%s736_s0 + $0xc] ss:$16 sm:%s88_s18]   ;;  %s425_s25 = smov 112   ;;  %s107_s28 = smov 3 }
   0xa   :  { %v57_v21 = vsel %vm14_vm2, %v355_v18, %v52_v19  ;;  %v362_v23 = vld [vmem:[%s736_s0 + $0xc] ss:$16 sm:%s93_s19]   ;;  %v91_v24 = vsel %vm6_vm0, %v361_v22, %v360_v20  ;;  %s110_s29 = smov 12  ;;  %v364_v27 = vld [vmem:[%s736_s0 + $0xb] ss:$16 sm:%s107_s28]   ;;  %s115_s5 = smov 48 }
   0xb   :  { %58 = vrot.lane.b32.xlu0 %v57_v21, %s425_s25  ;;  %v363_v25 = vld [vmem:[%s736_s0 + $0xc] ss:$16 sm:%s98_s24]   ;;  %v96_v26 = vsel %vm10_vm1, %v362_v23, %v91_v24  ;;  %s120_s6 = smov 192  ;;  %s129_s11 = smov 3  ;;  %vm214_vm12 = vcmask 523712   ;;  %vm236_vm13 = vcmask 458112  }
   0xc   :  { %v365_v28 = vld [vmem:[%s736_s0 + $0xb] ss:$16 sm:%s110_s29]   ;;  %v101_v29 = vsel %vm14_vm2, %v363_v25, %v96_v26  ;;  %s426_s12 = smov 96   ;;  %v368_v34 = vld [vmem:[%s736_s0 + $0xa] ss:$16 sm:%s129_s11]   ;;  %s132_s15 = smov 12 }
   0xd   :  { %v113_v30 = vsel %vm6_vm0, %v365_v28, %v364_v27  ;;  %v366_v31 = vld [vmem:[%s736_s0 + $0xb] ss:$16 sm:%s115_s5]   ;;  %102 = vrot.lane.b32.xlu1 %v101_v29, %s426_s12  ;;  %s137_s16 = smov 48  ;;  %s142_s21 = smov 192  ;;  %vm258_vm14 = vcmask 392512   ;;  %vm280_vm15 = vcmask 326912  }
   0xe   :  { %v367_v32 = vld [vmem:[%s736_s0 + $0xb] ss:$16 sm:%s120_s6]   ;;  %v118_v33 = vsel %vm10_vm1, %v366_v31, %v113_v30  ;;  %v369_v36 = vld [vmem:[%s736_s0 + $0xa] ss:$16 sm:%s132_s15]   ;;  %s427_s22 = smov 88   ;;  %s151_s25 = smov 3 }
   0xf   :  { %v123_v35 = vsel %vm14_vm2, %v367_v32, %v118_v33  ;;  %v370_v37 = vld [vmem:[%s736_s0 + $0xa] ss:$16 sm:%s137_s16]   ;;  %v135_v38 = vsel %vm6_vm0, %v369_v36, %v368_v34  ;;  %s154_s26 = smov 12  ;;  %v372_v41 = vld [vmem:[%s736_s0 + $0x9] ss:$16 sm:%s151_s25]   ;;  %s159_s2 = smov 48 }
  0x10   :  { %124 = vrot.lane.b32.xlu0 %v123_v35, %s427_s22  ;;  %v371_v39 = vld [vmem:[%s736_s0 + $0xa] ss:$16 sm:%s142_s21]   ;;  %v140_v40 = vsel %vm10_vm1, %v370_v37, %v135_v38  ;;  %s164_s3 = smov 192  ;;  %s173_s8 = smov 3 }
  0x11   :  { %v373_v42 = vld [vmem:[%s736_s0 + $0x9] ss:$16 sm:%s154_s26]   ;;  %v145_v43 = vsel %vm14_vm2, %v371_v39, %v140_v40  ;;  %s428_s9 = smov 80   ;;  %v376_v48 = vld [vmem:[%s736_s0 + $0x8] ss:$16 sm:%s173_s8]   ;;  %s176_s12 = smov 12 }
  0x12   :  { %v157_v44 = vsel %vm6_vm0, %v373_v42, %v372_v41  ;;  %v374_v45 = vld [vmem:[%s736_s0 + $0x9] ss:$16 sm:%s159_s2]   ;;  %146 = vrot.lane.b32.xlu1 %v145_v43, %s428_s9  ;;  %s181_s13 = smov 48  ;;  %s186_s18 = smov 192 }
  0x13   :  { %v375_v46 = vld [vmem:[%s736_s0 + $0x9] ss:$16 sm:%s164_s3]   ;;  %v162_v47 = vsel %vm10_vm1, %v374_v45, %v157_v44  ;;  %v377_v50 = vld [vmem:[%s736_s0 + $0x8] ss:$16 sm:%s176_s12]   ;;  %s429_s19 = smov 72   ;;  %s195_s22 = smov 3 }
  0x14   :  { %v167_v49 = vsel %vm14_vm2, %v375_v46, %v162_v47  ;;  %v378_v51 = vld [vmem:[%s736_s0 + $0x8] ss:$16 sm:%s181_s13]   ;;  %v179_v52 = vsel %vm6_vm0, %v377_v50, %v376_v48  ;;  %s198_s23 = smov 12  ;;  %v380_v55 = vld [vmem:[%s736_s0 + $0x7] ss:$16 sm:%s195_s22]   ;;  %s203_s28 = smov 48 }
  0x15   :  { %168 = vrot.lane.b32.xlu0 %v167_v49, %s429_s19  ;;  %v379_v53 = vld [vmem:[%s736_s0 + $0x8] ss:$16 sm:%s186_s18]   ;;  %v184_v54 = vsel %vm10_vm1, %v378_v51, %v179_v52  ;;  %s208_s29 = smov 192  ;;  %s217_s5 = smov 3 }
  0x16   :  { %v381_v56 = vld [vmem:[%s736_s0 + $0x7] ss:$16 sm:%s198_s23]   ;;  %v189_v57 = vsel %vm14_vm2, %v379_v53, %v184_v54  ;;  %s430_s6 = smov 64   ;;  %v384_v62 = vld [vmem:[%s736_s0 + $0x6] ss:$16 sm:%s217_s5]   ;;  %s220_s9 = smov 12 }
  0x17   :  { %v201_v58 = vsel %vm6_vm0, %v381_v56, %v380_v55  ;;  %v382_v59 = vld [vmem:[%s736_s0 + $0x7] ss:$16 sm:%s203_s28]   ;;  %190 = vrot.lane.b32.xlu1 %v189_v57, %s430_s6  ;;  %s225_s10 = smov 48  ;;  %s230_s15 = smov 192 }
  0x18   :  { %v383_v60 = vld [vmem:[%s736_s0 + $0x7] ss:$16 sm:%s208_s29]   ;;  %v206_v61 = vsel %vm10_vm1, %v382_v59, %v201_v58  ;;  %v385_v0 = vld [vmem:[%s736_s0 + $0x6] ss:$16 sm:%s220_s9]   ;;  %s431_s16 = smov 56   ;;  %s239_s19 = smov 3 }
  0x19   :  { %v211_v63 = vsel %vm14_vm2, %v383_v60, %v206_v61  ;;  %v386_v1 = vld [vmem:[%s736_s0 + $0x6] ss:$16 sm:%s225_s10]   ;;  %v223_v2 = vsel %vm6_vm0, %v385_v0, %v384_v62  ;;  %s242_s20 = smov 12  ;;  %v388_v5 = vld [vmem:[%s736_s0 + $0x5] ss:$16 sm:%s239_s19]   ;;  %s247_s25 = smov 48 }
  0x1a   :  { %212 = vrot.lane.b32.xlu0 %v211_v63, %s431_s16  ;;  %v387_v3 = vld [vmem:[%s736_s0 + $0x6] ss:$16 sm:%s230_s15]   ;;  %v228_v4 = vsel %vm10_vm1, %v386_v1, %v223_v2  ;;  %s252_s26 = smov 192  ;;  %s261_s2 = smov 3 }
  0x1b   :  { %v389_v6 = vld [vmem:[%s736_s0 + $0x5] ss:$16 sm:%s242_s20]   ;;  %v233_v7 = vsel %vm14_vm2, %v387_v3, %v228_v4  ;;  %s432_s3 = smov 48   ;;  %v392_v12 = vld [vmem:[%s736_s0 + $0x4] ss:$16 sm:%s261_s2]   ;;  %s264_s6 = smov 12 }
  0x1c   :  { %v245_v8 = vsel %vm6_vm0, %v389_v6, %v388_v5  ;;  %v390_v9 = vld [vmem:[%s736_s0 + $0x5] ss:$16 sm:%s247_s25]   ;;  %234 = vrot.lane.b32.xlu1 %v233_v7, %s432_s3  ;;  %s269_s7 = smov 48  ;;  %s274_s12 = smov 192 }
  0x1d   :  { %v391_v10 = vld [vmem:[%s736_s0 + $0x5] ss:$16 sm:%s252_s26]   ;;  %v250_v11 = vsel %vm10_vm1, %v390_v9, %v245_v8  ;;  %v393_v14 = vld [vmem:[%s736_s0 + $0x4] ss:$16 sm:%s264_s6]   ;;  %s433_s13 = smov 40   ;;  %s283_s16 = smov 3 }
  0x1e   :  { %v255_v13 = vsel %vm14_vm2, %v391_v10, %v250_v11  ;;  %v394_v15 = vld [vmem:[%s736_s0 + $0x4] ss:$16 sm:%s269_s7]   ;;  %v267_v16 = vsel %vm6_vm0, %v393_v14, %v392_v12  ;;  %s286_s17 = smov 12  ;;  %v396_v19 = vld [vmem:[%s736_s0 + $0x3] ss:$16 sm:%s283_s16]   ;;  %s291_s22 = smov 48 }
  0x1f   :  { %256 = vrot.lane.b32.xlu0 %v255_v13, %s433_s13  ;;  %v395_v17 = vld [vmem:[%s736_s0 + $0x4] ss:$16 sm:%s274_s12]   ;;  %v272_v18 = vsel %vm10_vm1, %v394_v15, %v267_v16  ;;  %s296_s23 = smov 192  ;;  %s305_s28 = smov 3 }
  0x20   :  { %v397_v20 = vld [vmem:[%s736_s0 + $0x3] ss:$16 sm:%s286_s17]   ;;  %v277_v21 = vsel %vm14_vm2, %v395_v17, %v272_v18  ;;  %s434_s29 = smov 32   ;;  %v400_v26 = vld [vmem:[%s736_s0 + $0x2] ss:$16 sm:%s305_s28]   ;;  %s308_s3 = smov 12 }
  0x21   :  { %v289_v22 = vsel %vm6_vm0, %v397_v20, %v396_v19  ;;  %v398_v23 = vld [vmem:[%s736_s0 + $0x3] ss:$16 sm:%s291_s22]   ;;  %278 = vrot.lane.b32.xlu1 %v277_v21, %s434_s29  ;;  %s313_s4 = smov 48  ;;  %s318_s9 = smov 192 }
  0x22   :  { %v399_v24 = vld [vmem:[%s736_s0 + $0x3] ss:$16 sm:%s296_s23]   ;;  %v294_v25 = vsel %vm10_vm1, %v398_v23, %v289_v22  ;;  %v401_v28 = vld [vmem:[%s736_s0 + $0x2] ss:$16 sm:%s308_s3]   ;;  %s435_s10 = smov 24   ;;  %s327_s13 = smov 3 }
  0x23   :  { %v299_v27 = vsel %vm14_vm2, %v399_v24, %v294_v25  ;;  %v402_v29 = vld [vmem:[%s736_s0 + $0x2] ss:$16 sm:%s313_s4]   ;;  %v311_v30 = vsel %vm6_vm0, %v401_v28, %v400_v26  ;;  %s330_s14 = smov 12  ;;  %v404_v33 = vld [vmem:[%s736_s0 + $0x1] ss:$16 sm:%s327_s13]   ;;  %s335_s19 = smov 48 }
  0x24   :  { %300 = vrot.lane.b32.xlu0 %v299_v27, %s435_s10  ;;  %v403_v31 = vld [vmem:[%s736_s0 + $0x2] ss:$16 sm:%s318_s9]   ;;  %v316_v32 = vsel %vm10_vm1, %v402_v29, %v311_v30  ;;  %s340_s20 = smov 192  ;;  %s2_s25 = smov 3 }
  0x25   :  { %v405_v34 = vld [vmem:[%s736_s0 + $0x1] ss:$16 sm:%s330_s14]   ;;  %v321_v35 = vsel %vm14_vm2, %v403_v31, %v316_v32  ;;  %s436_s26 = smov 16   ;;  %s4_s27 = smov 12  ;;  %v3_v40 = vld [vmem:[%s736_s0] ss:$16 sm:%s2_s25]  }
  0x26   :  { %v333_v36 = vsel %vm6_vm0, %v405_v34, %v404_v33  ;;  %v406_v37 = vld [vmem:[%s736_s0 + $0x1] ss:$16 sm:%s335_s19]   ;;  %322 = vrot.lane.b32.xlu1 %v321_v35, %s436_s26  ;;  %s8_s28 = smov 48  ;;  %s12_s2 = smov 192 }
  0x27   :  { %v407_v38 = vld [vmem:[%s736_s0 + $0x1] ss:$16 sm:%s340_s20]   ;;  %v338_v39 = vsel %vm10_vm1, %v406_v37, %v333_v36  ;;  %v5_v42 = vld [vmem:[%s736_s0] ss:$16 sm:%s4_s27]   ;;  %s437_s7 = smov 8  }
  0x28   :  { %v343_v41 = vsel %vm14_vm2, %v407_v38, %v338_v39  ;;  %v9_v43 = vld [vmem:[%s736_s0] ss:$16 sm:%s8_s28]   ;;  %v7_v44 = vsel %vm6_vm0, %v5_v42, %v3_v40  ;;  %vm302_vm0 = vcmask 261312  }
  0x29   :  { %344 = vrot.lane.b32.xlu0 %v343_v41, %s437_s7  ;;  %v13_v45 = vld [vmem:[%s736_s0] ss:$16 sm:%s12_s2]   ;;  %v11_v46 = vsel %vm10_vm1, %v9_v43, %v7_v44  ;;  %vm324_vm1 = vcmask 195712  }
  0x2a   :  { %v15_v47 = vsel %vm14_vm2, %v13_v45, %v11_v46  ;;  %vm346_vm2 = vcmask 130112  }
  0x2b   :  { %17 = vst.msk [vmem:[%s737_s1] sm:$0xff] %vm16_vm3, %v15_v47  }
  0x78   :  { %v37_v48 = vpop.permute.xlu0 %36  }
  0x79   :  { %39 = vst.msk [vmem:[%s737_s1] sm:$0xff] %vm38_vm4, %v37_v48  }
  0x7a   :  { %v81_v49 = vpop.permute.xlu1 %80  }
  0x7d   :  { %v59_v50 = vpop.permute.xlu0 %58  }
  0x7e   :  { %61 = vst.msk [vmem:[%s737_s1] sm:$0xff] %vm60_vm5, %v59_v50  }
  0x7f   :  { %83 = vst.msk [vmem:[%s737_s1] sm:$0xff] %vm82_vm6, %v81_v49   ;;  %v103_v51 = vpop.permute.xlu1 %102  }
  0x80   :  { %105 = vst.msk [vmem:[%s737_s1] sm:$0xff] %vm104_vm7, %v103_v51  }
  0x82   :  { %v125_v52 = vpop.permute.xlu0 %124  }
  0x83   :  { %127 = vst.msk [vmem:[%s737_s1] sm:$0xff] %vm126_vm8, %v125_v52  }
  0x84   :  { %v147_v53 = vpop.permute.xlu1 %146  }
  0x85   :  { %149 = vst.msk [vmem:[%s737_s1] sm:$0xff] %vm148_vm9, %v147_v53  }
  0x87   :  { %v169_v54 = vpop.permute.xlu0 %168  }
  0x88   :  { %171 = vst.msk [vmem:[%s737_s1] sm:$0xff] %vm170_vm10, %v169_v54  }
  0x89   :  { %v191_v55 = vpop.permute.xlu1 %190  }
  0x8a   :  { %193 = vst.msk [vmem:[%s737_s1] sm:$0xff] %vm192_vm11, %v191_v55  }
  0x8c   :  { %v213_v56 = vpop.permute.xlu0 %212  }
  0x8d   :  { %215 = vst.msk [vmem:[%s737_s1] sm:$0xff] %vm214_vm12, %v213_v56  }
  0x8e   :  { %v235_v57 = vpop.permute.xlu1 %234  }
  0x8f   :  { %237 = vst.msk [vmem:[%s737_s1] sm:$0xff] %vm236_vm13, %v235_v57  }
  0x91   :  { %v257_v58 = vpop.permute.xlu0 %256  }
  0x92   :  { %259 = vst.msk [vmem:[%s737_s1] sm:$0xff] %vm258_vm14, %v257_v58  }
  0x93   :  { %v279_v59 = vpop.permute.xlu1 %278  }
  0x94   :  { %281 = vst.msk [vmem:[%s737_s1] sm:$0xff] %vm280_vm15, %v279_v59  }
  0x96   :  { %v301_v60 = vpop.permute.xlu0 %300  }
  0x97   :  { %303 = vst.msk [vmem:[%s737_s1] sm:$0xff] %vm302_vm0, %v301_v60  }
  0x98   :  { %v323_v61 = vpop.permute.xlu1 %322  }
  0x99   :  { %325 = vst.msk [vmem:[%s737_s1] sm:$0xff] %vm324_vm1, %v323_v61  }
  0x9b   :  { %v345_v62 = vpop.permute.xlu0 %344  }
  0x9c   :  { %347 = vst.msk [vmem:[%s737_s1] sm:$0xff] %vm346_vm2, %v345_v62  }

// kernel: tile.23
= control target key start
LH: loop header
LB: loop body
LE: loop exit
PB: predicated region body
PF: predicated region fallthrough
CT: control target
= control target key end

     0   :  { %s28_s0 = inlined_call_operand.vmem [shape: f32[8], index: 0, kind: input, shape index: {}]   ;;  %s29_s1 = inlined_call_operand.vmem [shape: f32[16,8], index: 1, kind: output, shape index: {}]  }
   0x1   :  { %v4_v0 = vld [vmem:[%s28_s0] ss:$0 sm:$0xff] }
   0x2   :  { %5 = vst [vmem:[%s29_s1] sm:$0xff] %v4_v0  ;;  %8 = vst [vmem:[%s29_s1 + $0x8] sm:$0xff] %v4_v0 }

// kernel: tile.24
= control target key start
LH: loop header
LB: loop body
LE: loop exit
PB: predicated region body
PF: predicated region fallthrough
CT: control target
= control target key end

     0   :  { %s131_s10 = smov 120   ;;  %s132_s11 = smov 104   ;;  %vm3_vm0 = vcmask 64512   ;;  %vm9_vm1 = vcmask 1048512   ;;  %vm15_vm2 = vcmask 982912   ;;  %vm21_vm3 = vcmask 917312   ;;  %s207_s0 = inlined_call_operand.vmem [shape: f32[16,8], index: 0, kind: input, shape index: {}]   ;;  %s208_s1 = inlined_call_operand.vmem [shape: f32[1,128], index: 1, kind: output, shape index: {}]  }
   0x1   :  { %v101_v0 = vld [vmem:[%s207_s0 + $0xf] sm:$0x1]   ;;  %v103_v1 = vld [vmem:[%s207_s0 + $0xd] sm:$0x1]   ;;  %v102_v2 = vld [vmem:[%s207_s0 + $0xe] sm:$0x1]  }
   0x2   :  { %7 = vrot.lane.b32.xlu0 %v101_v0, %s131_s10  ;;  %19 = vrot.lane.b32.xlu1 %v103_v1, %s132_s11  ;;  %v104_v3 = vld [vmem:[%s207_s0 + $0xc] sm:$0x1]   ;;  %s133_s16 = smov 112   ;;  %s134_s17 = smov 96   ;;  %v105_v4 = vld [vmem:[%s207_s0 + $0xb] sm:$0x1]  }
   0x3   :  { %v106_v5 = vld [vmem:[%s207_s0 + $0xa] sm:$0x1]   ;;  %v2_v6 = vld [vmem:[%s207_s0] sm:$0x1]   ;;  %s135_s24 = smov 88   ;;  %s136_s25 = smov 80  }
   0x4   :  { %4 = vst.msk [vmem:[#allocation0] sm:$0x1] %vm3_vm0, %v2_v6   ;;  %v107_v7 = vld [vmem:[%s207_s0 + $0x9] sm:$0x1]   ;;  %v108_v8 = vld [vmem:[%s207_s0 + $0x8] sm:$0x1]  }
   0x5   :  { %s137_s30 = smov 72   ;;  %s138_s2 = smov 64   ;;  %v109_v9 = vld [vmem:[%s207_s0 + $0x7] sm:$0x1]   ;;  %v110_v10 = vld [vmem:[%s207_s0 + $0x6] sm:$0x1]  }
   0x6   :  { %13 = vrot.lane.b32.xlu0 %v102_v2, %s133_s16  ;;  %25 = vrot.lane.b32.xlu1 %v104_v3, %s134_s17  ;;  %s139_s7 = smov 56   ;;  %s140_s8 = smov 48   ;;  %v111_v11 = vld [vmem:[%s207_s0 + $0x5] sm:$0x1]   ;;  %v112_v12 = vld [vmem:[%s207_s0 + $0x4] sm:$0x1]  }
   0x7   :  { %s141_s13 = smov 40   ;;  %s142_s14 = smov 32   ;;  %v113_v13 = vld [vmem:[%s207_s0 + $0x3] sm:$0x1]   ;;  %v114_v14 = vld [vmem:[%s207_s0 + $0x2] sm:$0x1]  }
   0x8   :  { %s143_s19 = smov 24   ;;  %s144_s20 = smov 16   ;;  %v115_v15 = vld [vmem:[%s207_s0 + $0x1] sm:$0x1]   ;;  %vm27_vm4 = vcmask 851712   ;;  %vm33_vm5 = vcmask 786112  }
   0x9   :  { %s145_s0 = smov 8   ;;  %vm39_vm6 = vcmask 720512   ;;  %vm45_vm7 = vcmask 654912   ;;  %vm51_vm8 = vcmask 589312   ;;  %vm57_vm9 = vcmask 523712  }
   0xa   :  { %31 = vrot.lane.b32.xlu0 %v105_v4, %s135_s24  ;;  %37 = vrot.lane.b32.xlu1 %v106_v5, %s136_s25  ;;  %vm63_vm10 = vcmask 458112   ;;  %vm69_vm11 = vcmask 392512   ;;  %vm75_vm12 = vcmask 326912   ;;  %vm81_vm13 = vcmask 261312  }
   0xb   :  { %vm87_vm14 = vcmask 195712   ;;  %vm93_vm15 = vcmask 130112  }
   0xe   :  { %43 = vrot.lane.b32.xlu0 %v107_v7, %s137_s30  ;;  %49 = vrot.lane.b32.xlu1 %v108_v8, %s138_s2 }
  0x12   :  { %55 = vrot.lane.b32.xlu0 %v109_v9, %s139_s7  ;;  %61 = vrot.lane.b32.xlu1 %v110_v10, %s140_s8 }
  0x16   :  { %67 = vrot.lane.b32.xlu0 %v111_v11, %s141_s13  ;;  %73 = vrot.lane.b32.xlu1 %v112_v12, %s142_s14 }
  0x1a   :  { %79 = vrot.lane.b32.xlu0 %v113_v13, %s143_s19  ;;  %85 = vrot.lane.b32.xlu1 %v114_v14, %s144_s20 }
  0x1e   :  { %91 = vrot.lane.b32.xlu0 %v115_v15, %s145_s0 }
  0x74   :  { %v8_v16 = vpop.permute.xlu0 %7   ;;  %v20_v17 = vpop.permute.xlu1 %19  }
  0x75   :  { %10 = vst.msk [vmem:[#allocation0] sm:$0x1] %vm9_vm1, %v8_v16  }
  0x78   :  { %v14_v18 = vpop.permute.xlu0 %13   ;;  %v26_v19 = vpop.permute.xlu1 %25  }
  0x79   :  { %16 = vst.msk [vmem:[#allocation0] sm:$0x1] %vm15_vm2, %v14_v18  }
  0x7a   :  { %22 = vst.msk [vmem:[#allocation0] sm:$0x1] %vm21_vm3, %v20_v17  }
  0x7b   :  { %28 = vst.msk [vmem:[#allocation0] sm:$0x1] %vm27_vm4, %v26_v19  }
  0x7c   :  { %v32_v20 = vpop.permute.xlu0 %31   ;;  %v38_v21 = vpop.permute.xlu1 %37  }
  0x7d   :  { %34 = vst.msk [vmem:[#allocation0] sm:$0x1] %vm33_vm5, %v32_v20  }
  0x7e   :  { %40 = vst.msk [vmem:[#allocation0] sm:$0x1] %vm39_vm6, %v38_v21  }
  0x80   :  { %v44_v22 = vpop.permute.xlu0 %43   ;;  %v50_v23 = vpop.permute.xlu1 %49  }
  0x81   :  { %46 = vst.msk [vmem:[#allocation0] sm:$0x1] %vm45_vm7, %v44_v22  }
  0x82   :  { %52 = vst.msk [vmem:[#allocation0] sm:$0x1] %vm51_vm8, %v50_v23  }
  0x84   :  { %v56_v24 = vpop.permute.xlu0 %55   ;;  %v62_v25 = vpop.permute.xlu1 %61  }
  0x85   :  { %58 = vst.msk [vmem:[#allocation0] sm:$0x1] %vm57_vm9, %v56_v24  }
  0x86   :  { %64 = vst.msk [vmem:[#allocation0] sm:$0x1] %vm63_vm10, %v62_v25  }
  0x88   :  { %v68_v26 = vpop.permute.xlu0 %67   ;;  %v74_v27 = vpop.permute.xlu1 %73  }
  0x89   :  { %70 = vst.msk [vmem:[#allocation0] sm:$0x1] %vm69_vm11, %v68_v26  }
  0x8a   :  { %76 = vst.msk [vmem:[#allocation0] sm:$0x1] %vm75_vm12, %v74_v27  }
  0x8c   :  { %v80_v28 = vpop.permute.xlu0 %79   ;;  %v86_v29 = vpop.permute.xlu1 %85  }
  0x8d   :  { %82 = vst.msk [vmem:[#allocation0] sm:$0x1] %vm81_vm13, %v80_v28  }
  0x8e   :  { %88 = vst.msk [vmem:[#allocation0] sm:$0x1] %vm87_vm14, %v86_v29  }
  0x90   :  { %v92_v30 = vpop.permute.xlu0 %91  }
  0x91   :  { %94 = vst.msk [vmem:[#allocation0] sm:$0x1] %vm93_vm15, %v92_v30  }
  0x98   :  { %v98_v31 = vld [vmem:[#allocation0] sm:$0x1] }
  0x99   :  { %100 = vst [vmem:[%s208_s1] sm:$0x1] %v98_v31 }

// kernel: branch_conv_block_up.3
= control target key start
LH: loop header
LB: loop body
LE: loop exit
PB: predicated region body
PF: predicated region fallthrough
CT: control target
= control target key end

     0   :  { %s111_s0 = inlined_call_operand.vmem [shape: bf16[32,128], index: 0, kind: input, shape index: {}]   ;;  %s112_s1 = inlined_call_operand.vmem [shape: f32[1,128], index: 1, kind: input, shape index: {}]   ;;  %s113_s2 = inlined_call_operand.vmem [shape: f32[1,128], index: 2, kind: input, shape index: {}]   ;;  %s114_s3 = inlined_call_operand.vmem [shape: f32[32,128], index: 3, kind: output, shape index: {}]  }
   0x1   :  { %v59_v0 = vld [vmem:[%s111_s0] sm:$0xff]   ;;  %v66_v4 = vld [vmem:[%s111_s0 + $0x8] sm:$0xff]  }
   0x2   :  { %v56_v1 = vld [vmem:[%s112_s1] ss:$0 sm:$0xff]  ;;  %v60_v2 = vunpack.c.l.bf16 %v59_v0  ;;  %v61_v3 = vunpack.c.h.bf16 %v59_v0  ;;  %v64_v6 = vunpack.c.l.bf16 %v66_v4  ;;  %v65_v7 = vunpack.c.h.bf16 %v66_v4 }
   0x3   :  { %v57_v5 = vld [vmem:[%s113_s2] ss:$0 sm:$0xff] }
   0x4   :  { %v29_v8 = vmul.f32 %v60_v2, %v56_v1  ;;  %v30_v9 = vmul.f32 %v61_v3, %v56_v1  ;;  %v31_v10 = vmul.f32 %v64_v6, %v56_v1  ;;  %v32_v11 = vmul.f32 %v65_v7, %v56_v1 }
   0x6   :  { %v40_v12 = vadd.f32 %v57_v5, %v29_v8  ;;  %v41_v13 = vadd.f32 %v57_v5, %v30_v9  ;;  %v42_v14 = vadd.f32 %v57_v5, %v31_v10  ;;  %v43_v15 = vadd.f32 %v57_v5, %v32_v11 }
   0x8   :  { %v44_v16 = vmax.f32 %v40_v12, 0.0  ;;  %v45_v17 = vmax.f32 %v41_v13, 0.0  ;;  %v46_v18 = vmax.f32 %v42_v14, 0.0  ;;  %v47_v19 = vmax.f32 %v43_v15, 0.0 }
   0xa   :  { %48 = vst [vmem:[%s114_s3] sm:$0xff] %v44_v16  ;;  %49 = vst [vmem:[%s114_s3 + $0x8] sm:$0xff] %v45_v17 }
   0xb   :  { %50 = vst [vmem:[%s114_s3 + $0x10] sm:$0xff] %v46_v18  ;;  %51 = vst [vmem:[%s114_s3 + $0x18] sm:$0xff] %v47_v19 }

// kernel: branch_conv_block_up.2
= control target key start
LH: loop header
LB: loop body
LE: loop exit
PB: predicated region body
PF: predicated region fallthrough
CT: control target
= control target key end

     0   :  { %s1015_s15 = smov 0   ;;  %s1017_s16 = smov 0   ;;  %s1116_s0 = inlined_call_operand.vmem [shape: bf16[2,1,18,72], index: 0, kind: input, shape index: {}]   ;;  %s1117_s1 = inlined_call_operand.vmem [shape: bf16[3,72,128], index: 1, kind: input, shape index: {}]   ;;  %s1118_s2 = inlined_call_operand.vmem [shape: f32[8,128], index: 2, kind: input, shape index: {}]   ;;  %s1119_s3 = inlined_call_operand.vmem [shape: bf16[2,1,16,128], index: 3, kind: output, shape index: {0}]   ;;  %s1120_s4 = inlined_call_operand.vmem [shape: f32[2,2,8], index: 4, kind: output, shape index: {1}]  }
   0x1   :  { %s1019_s17 = smov 0  }
   0x2 LB: > { %s27_s18 = sadd.s32 1, %s982_s16  ;;  %p789_p0 = scmp.ge.s32.totalorder %s986_s17, 1  ;;  %s986_s17 = sphi %s1019_s17, %s15_s17   ;;  %s982_s16 = sphi %s1017_s16, %s1122_s16   ;;  %s978_s15 = sphi %s1015_s15, %s1121_s15  }
   0x3   : > { %p29_p1 = scmp.ge.s32.totalorder %s27_s18, 2  ;;  %p185_p2 = scmp.lt.s32.totalorder %s986_s17, 3 }
   0x5   : > { %s1124_s18 = smov (%p29_p1, %s27_s18), 0  ;;  %p186_p3 = pnand %p789_p0, %p185_p2 }
   0x6   : > { %v947_v0 = vld [vmem:[%s1117_s1] sm:$0xff] (!%p186_p3)   ;;  %p223_p4 = scmp.lt.s32.totalorder (!%p186_p3), %s978_s15, 1  ;;  %v949_v2 = vld [vmem:[%s1117_s1 + $0x8] sm:$0xff] (!%p186_p3)   ;;  %v951_v4 = vld [vmem:[%s1117_s1 + $0x10] sm:$0xff] (!%p186_p3)   ;;  %vm293_vm0 = vcmask (!%p186_p3), 588800   ;;  %vm300_vm1 = vcmask (!%p186_p3), 1043456  }
   0x7   : > { %189 = sbr.rel (%p186_p3) target bundleno = 499 (0x1f3), region = 32  ;;  %v948_v1 = vld [vmem:[%s1117_s1 + $0x24] sm:$0xff] (!%p186_p3)   ;;  %870 = vmatprep.subr.bf16.mxu0 (!%p186_p3), %v947_v0  ;;  %v950_v3 = vld [vmem:[%s1117_s1 + $0x2c] sm:$0xff] (!%p186_p3)   ;;  %v952_v5 = vld [vmem:[%s1117_s1 + $0x34] sm:$0xff] (!%p186_p3)   ;;  %v988_v21 = vmov (!%p186_p3), 0.0   ;;  %vm989_vm2 = vmmov (!%p186_p3), 0  }
   0x8   : > { %884 = vmatprep.subr.bf16.mxu1 (!%p186_p3), %v948_v1  ;;  %871 = vmatpush3.bf16.msra.mxu0 (!%p186_p3), %v947_v0  ;;  %v953_v6 = vld [vmem:[%s1117_s1 + $0x18] sm:$0xff] (!%p186_p3)   ;;  %v955_v9 = vld [vmem:[%s1117_s1 + $0x20] ss:$0 sps:$4 sm:$0xff] (!%p186_p3)   ;;  %v956_v10 = vld [vmem:[%s1117_s1 + $0x44] ss:$0 sps:$4 sm:$0xff] (!%p186_p3)   ;;  %vm530_vm3 = vcmask (!%p186_p3), 1046528  }
   0x9   : > { %885 = vmatpush3.bf16.msra.mxu1 (!%p186_p3), %v948_v1  ;;  %872 = vmatprep.subr.bf16.mxu0 (!%p186_p3), %v949_v2  ;;  %v954_v7 = vld [vmem:[%s1117_s1 + $0x3c] sm:$0xff] (!%p186_p3)   ;;  %v302_v11 = vsel (!%p186_p3), %vm300_vm1, %v955_v9, 0  ;;  %v959_v12 = vld [vmem:[%s1117_s1 + $0x48] sm:$0xff] (!%p186_p3)   ;;  %v389_v13 = vsel (!%p186_p3), %vm300_vm1, %v956_v10, 0  ;;  %v960_v15 = vld [vmem:[%s1117_s1 + $0x50] sm:$0xff] (!%p186_p3)   ;;  %vm543_vm4 = vcmask (!%p186_p3), 1045504  }
   0xa   : > { %886 = vmatprep.subr.bf16.mxu1 (!%p186_p3), %v950_v3  ;;  %v961_v16 = vld [vmem:[%s1117_s1 + $0x58] sm:$0xff] (!%p186_p3)   ;;  %v962_v17 = vld [vmem:[%s1117_s1 + $0x60] sm:$0xff] (!%p186_p3)   ;;  %v963_v18 = vld [vmem:[%s1117_s1 + $0x68] ss:$0 sps:$4 sm:$0xff] (!%p186_p3)   ;;  %vm579_vm5 = vcmask (!%p186_p3), 1040384   ;;  %vm656_vm6 = vcmask (!%p186_p3), 58368  }
   0xb   : > { %v477_v19 = vsel (!%p186_p3), %vm300_vm1, %v963_v18, 0  ;;  %v581_v20 = vld [vmem:[%s1118_s2] sm:$0xff] (!%p186_p3) }
   0xc   : > { %873 = vmatpush3.bf16.msra.mxu0 (!%p186_p3), %v949_v2 }
   0xd   : > { %887 = vmatpush3.bf16.msra.mxu1 (!%p186_p3), %v950_v3  ;;  %874 = vmatprep.subr.bf16.mxu0 (!%p186_p3), %v951_v4 }
   0xe   : > { %s1126_s15 = smov (!%p223_p4, %s978_s15), 1  ;;  %888 = vmatprep.subr.bf16.mxu1 %v952_v5 }
   0xf   : > { %s920_s5 = smul.u32 12, %s1126_s15  ;;  %s839_s7 = sshll.u32 %s1126_s15, 3 }
  0x10   : > { %875 = vmatpush3.bf16.msra.mxu0 %v951_v4  ;;  %s240_s10 = scalar_lea.vmem %s1119_s3, %s839_s7  ;;  %s793_s11 = sshll.u32 %s1126_s15, 1 }
  0x11   : > { %s231_s8 = scalar_lea.vmem %s1116_s0, %s920_s5  ;;  %889 = vmatpush3.bf16.msra.mxu1 %v952_v5  ;;  %876 = vmatprep.subr.bf16.mxu0 %v953_v6  ;;  %s244_s14 = scalar_lea.vmem %s1120_s4, %s793_s11 }
  0x12   : > { %v957_v8 = vld [vmem:[%s231_s8] sm:$0xff]   ;;  %890 = vmatprep.subr.bf16.mxu1 %v954_v7  ;;  %v958_v14 = vld [vmem:[%s231_s8 + $0x8] ss:$0 sps:$4 sm:$0x11]   ;;  %657 = vst.msk [vmem:[%s244_s14] sm:$0x3] %vm656_vm6, %v988_v21 }
  0x13   : > { %880 = vmatprep.mubr.msk.bf16.mxu0 %vm293_vm0, %v957_v8  ;;  %894 = vmatprep.mubr.msk.bf16.mxu1 %vm293_vm0, %v957_v8 }
  0x14   : > { %877 = vmatpush3.bf16.msra.mxu0 %v953_v6 }
  0x15   : > { %891 = vmatpush3.bf16.msra.mxu1 %v954_v7  ;;  %917 = vmatprep.subr.msk.bf16.mxu0 %vm300_vm1, %v955_v9 }
  0x16   : > { %918 = vmatprep.subr.msk.bf16.mxu1 %vm300_vm1, %v956_v10 }
  0x18   : > { %879 = vmatpush3.bf16.msra.mxu0 %v302_v11 }
  0x19   : > { %893 = vmatpush3.bf16.msra.mxu1 %v389_v13  ;;  %898 = vmatprep.subr.bf16.mxu0 %v959_v12  ;;  %v658_v2 = vld [vmem:[%s244_s14] sm:$0x3] }
  0x1a   : > { %912 = vmatprep.subr.mxu1 %v988_v21 }
  0x1b   : > { %881 = vmatmul.mubr.msk.bf16.vlgmr.msra.gmra.mrb[0].mxu0 %vm293_vm0, %v958_v14 }
  0x1c   : > { %895 = vmatmul.mubr.msk.bf16.vlgmr.msra.gmra.mrb[0].mxu1 %vm293_vm0, %v958_v14  ;;  %899 = vmatpush3.bf16.msra.mxu0 %v959_v12 }
  0x1d   : > { %900 = vmatprep.subr.bf16.mxu0 %v960_v15  ;;  %908 = vmatprep.mubr.msk.bf16.mxu0 %vm293_vm0, %v957_v8 }
  0x1e   : > { %914 = vmatprep.mubr.msk.f32.mxu1 %vm989_vm2, %v988_v21 }
  0x20   : > { %901 = vmatpush3.bf16.msra.mxu0 %v960_v15 }
  0x21   : > { %902 = vmatprep.subr.bf16.mxu0 %v961_v16 }
  0x22   : > { %913 = vmatpush3.xpose.msra.mxu1 %v581_v20 }
  0x24   : > { %903 = vmatpush3.bf16.msra.mxu0 %v961_v16 }
  0x25   : > { %904 = vmatprep.subr.bf16.mxu0 %v962_v17 }
  0x28   : > { %905 = vmatpush3.bf16.msra.mxu0 %v962_v17 }
  0x29   : > { %919 = vmatprep.subr.msk.bf16.mxu0 %vm300_vm1, %v963_v18 }
  0x2c   : > { %907 = vmatpush3.bf16.msra.mxu0 %v477_v19 }
  0x2f   : > { %909 = vmatmul.mubr.msk.bf16.vlgmr.msra.gmra.mrb[4].mxu0 %vm293_vm0, %v958_v14 }
  0xee   : > { %v882_v22 = vpop.f32.mrb[0].mxu0 }
  0xef   : > { %v896_v23 = vpop.f32.mrb[0].mxu1  ;;  %v338_v24 = vpop.f32.mrb[1].mxu0 }
  0xf0   : > { %v425_v25 = vpop.f32.mrb[1].mxu1  ;;  %v883_v26 = vpop.f32.mrb[2].mxu0  ;;  %v534_v27 = vrot.slane %v896_v23, 1 }
  0xf1   : > { %v531_v28 = vrot.slane %v425_v25, 1  ;;  %v897_v29 = vpop.f32.mrb[2].mxu1  ;;  %v341_v30 = vpop.f32.mrb[3].mxu0 }
  0xf2   : > { %v428_v31 = vpop.f32.mrb[3].mxu1 }
  0xf3   : > { %v532_v32 = vrot.slane %v428_v31, 1 }
  0xf5   : > { %v533_v33 = vsel %vm530_vm3, %v531_v28, %v532_v32  ;;  %v535_v34 = vsel %vm530_vm3, %v532_v32, %v534_v27 }
  0xf6   : > { %v538_v35 = vadd.f32 %v533_v33, %v338_v24  ;;  %v539_v36 = vadd.f32 %v535_v34, %v341_v30 }
 0x102   : > { %v910_v37 = vpop.f32.mrb[4].mxu0 }
 0x103   : > { %v513_v38 = vpop.f32.mrb[5].mxu0  ;;  %v547_v41 = vrot.slane %v910_v37, 2 }
 0x104   : > { %v911_v39 = vpop.f32.mrb[6].mxu0  ;;  %v544_v42 = vrot.slane %v513_v38, 2 }
 0x105   : > { %v516_v40 = vpop.f32.mrb[7].mxu0 }
 0x106   : > { %v545_v43 = vrot.slane %v516_v40, 2 }
 0x108   : > { %v546_v44 = vsel %vm543_vm4, %v544_v42, %v545_v43  ;;  %v548_v45 = vsel %vm543_vm4, %v545_v43, %v547_v41 }
 0x109   : > { %v551_v46 = vadd.f32 %v546_v44, %v538_v35  ;;  %v552_v47 = vadd.f32 %v548_v45, %v539_v36 }
 0x10b   : > { %v845_v48 = vpack.c.bf16 %v552_v47, %v551_v46  ;;  %v563_v49 = vadd.f32 %v552_v47, %v551_v46  ;;  %v570_v50 = vmul.f32 %v551_v46, %v551_v46  ;;  %v571_v51 = vmul.f32 %v552_v47, %v552_v47 }
 0x10d   : > { %846 = vst [vmem:[%s240_s10] sm:$0xff] %v845_v48   ;;  %v564_v52 = vrot.slane %v563_v49, 4  ;;  %v572_v53 = vadd.f32 %v571_v51, %v570_v50 }
 0x10f   : > { %v565_v54 = vadd.f32 %v564_v52, %v563_v49  ;;  %v573_v55 = vrot.slane %v572_v53, 4 }
 0x111   : > { %v566_v56 = vrot.slane %v565_v54, 2  ;;  %v574_v57 = vadd.f32 %v573_v55, %v572_v53 }
 0x113   : > { %v567_v58 = vadd.f32 %v566_v56, %v565_v54  ;;  %v575_v59 = vrot.slane %v574_v57, 2 }
 0x115   : > { %v568_v60 = vrot.slane %v567_v58, 1  ;;  %v576_v61 = vadd.f32 %v575_v59, %v574_v57 }
 0x117   : > { %v577_v62 = vrot.slane %v576_v61, 1  ;;  %v569_v63 = vadd.f32 %v568_v60, %v567_v58 }
 0x119   : > { %v578_v0 = vadd.f32 %v577_v62, %v576_v61 }
 0x11b   : > { %v580_v1 = vsel %vm579_vm5, %v569_v63, %v578_v0 }
 0x11c   : > { %915 = vmatmul.mubr.f32.vlgmr.msra.gmra.mrb[4].mxu1 %v580_v1 }
 0x1ef   : > { %v648_v3 = vpop.f32.mrb[4].mxu1 }
 0x1f0   : > { %v659_v4 = vadd.f32 %v658_v2, %v648_v3  ;;  %v916_v5 = vpop.f32.mrb[5].mxu1 }
 0x1f2   : > { %661 = vst.msk [vmem:[%s244_s14] sm:$0x3] %vm656_vm6, %v659_v4 }
 0x1f3 PF: > { %s15_s17 = sadd.s32 1, %s986_s17   ;;  %s1121_s15 = smov %s982_s16 }
 0x1f4   : > { %p12_p5 = scmp.ge.s32.totalorder %s15_s17, 4   ;;  %s1122_s16 = smov %s1124_s18 }
 0x1f6   :  { %14 = sbr.rel (!%p12_p5) target bundleno = 2 (0x2), region = 80 }

</bundles_post_ra>
